<compile_context>
chip_gen: v6e
topology: v6e:2x2x1
jax: 0.10.0
libtpu: 0.0.40
codegen_flags: <defaults>
</compile_context>

<pallas_src>
import functools
import numpy as np

import jax
import jax.numpy as jnp
from jax.experimental import pallas as pl
from jax.experimental.pallas import tpu as pltpu


_COMPUTE_DTYPE = jnp.bfloat16   # MXU feed dtype; set to jnp.float32 for exact f32 parity.


def _gaussian_taps(scale):
    """1-D normalized Gaussian taps + geometry, matching AntiAliasInterpolation2d."""
    sigma = (1.0 / scale - 1.0) / 2.0
    K = 2 * round(sigma * 4) + 1
    ka = K // 2
    stride = int(1.0 / scale)          # parity with the torch module (int(1/scale))
    mean = (K - 1) / 2.0
    ax = np.arange(K, dtype=np.float64)
    g = np.exp(-((ax - mean) ** 2) / (2.0 * sigma ** 2))
    g = g / g.sum()                    # outer(g, g) == the module's normalized 2-D kernel
    return K, ka, stride, g


def _projection_matrix(size, scale):
    """D (out_size x size): zero padding and the ::stride subsample folded in:
       out[r] = sum_t g[t] * x[r*stride + t - ka]  (strided Toeplitz)."""
    K, ka, stride, g = _gaussian_taps(scale)
    out_size = len(range(0, size, stride))
    D = np.zeros((out_size, size), np.float64)
    for r in range(out_size):
        for t in range(K):
            src = r * stride + t - ka
            if 0 <= src < size:
                D[r, src] += g[t]
    return out_size, D


@functools.lru_cache(maxsize=None)
def _vmem_limit_bytes():
    """Generation-aware scoped-VMEM limit (v7x: 64 MiB per TC; v5e/v6e: 128 MiB)."""
    cap = None
    try:
        cap = getattr(pltpu.get_tpu_info(), "vmem_capacity_bytes", None)
    except Exception:
        cap = None
    if not cap:
        cap = 64 * 1024 * 1024         # safe floor (v7x per-TensorCore VMEM)
    return int(min(cap * 3 // 4, 96 * 1024 * 1024))


def _plan_blocking(nc, H, W, geoms, in_bytes, out_bytes, cdt_bytes):
    """Pick planes-per-grid-step Cb from the VMEM budget; pad nc up to a multiple of Cb."""
    usable = int(_vmem_limit_bytes() * 0.7)          # slack for pipeline bookkeeping
    in_per = H * W * in_bytes
    out_per = sum(Ho * Wo * out_bytes for Ho, Wo in geoms)
    # live intermediates of the widest scale: t(f32) + t(compute) + broadcast Dv + o(f32)
    inter_per = max(H * Wo * (4 + cdt_bytes) + Ho * H * cdt_bytes + Ho * Wo * 4
                    for Ho, Wo in geoms)
    fixed = 2 * sum((Ho * H + W * Wo) * cdt_bytes for Ho, Wo in geoms)   # weights (dbl-buf)
    per_cb = 2 * (in_per + out_per) + inter_per      # input/output blocks are double-buffered
    cb_cap = max(1, (usable - fixed) // per_cb)
    if nc >= 2:
        # Keep >= 2 grid steps: both v7x TensorCores get work and the DMA pipeline overlaps.
        cb_cap = min(cb_cap, -(-nc // 2))
    cb_cap = min(cb_cap, nc)
    num_blocks = -(-nc // cb_cap)
    cb = -(-nc // num_blocks)                        # rebalance to minimize padded planes
    return cb, num_blocks * cb


def _make_kernel(n_scales, Cb, H, compute_dtype):
    def kernel(*refs):
        x_ref = refs[0]
        o_refs = refs[1 + 2 * n_scales:]
        # (Cb, H, W) -> (Cb*H, W): merge the plane dim into the matmul M dim (layout-free
        # leading-dim reshape).  Cast to the MXU feed dtype on-chip.
        xr = x_ref[...].astype(compute_dtype).reshape(Cb * H, -1)
        for si in range(n_scales):                   # n_scales is tiny (pyramid levels)
            dv = refs[1 + 2 * si][...]               # (Ho, H)  vertical blur + downsample
            dht = refs[2 + 2 * si][...]              # (W, Wo)  horizontal blur + downsample
            Ho = dv.shape[0]
            Wo = dht.shape[1]
            # Horizontal pass: one big MXU matmul, M = Cb*H.
            t = jnp.dot(xr, dht, preferred_element_type=jnp.float32)      # (Cb*H, Wo) f32
            t = t.reshape(Cb, H, Wo).astype(compute_dtype)
            # Vertical pass: single batched matmul over the Cb planes (no per-plane unroll).
            dvb = jnp.broadcast_to(dv[None, :, :], (Cb, Ho, H))
            o = jax.lax.dot_general(
                dvb, t,
                dimension_numbers=(((2,), (1,)), ((0,), (0,))),
                preferred_element_type=jnp.float32)                       # (Cb, Ho, Wo) f32
            o_refs[si][...] = o.astype(o_refs[si].dtype)
    return kernel


@functools.partial(jax.jit, static_argnames=("scales",))
def _pyramid_downsample(x, scales):
    """Fused Pallas anti-alias downsample for all non-unit scales.  x: (N, C, H, W)."""
    N, C, H, W = x.shape
    nc = N * C
    cdt = _COMPUTE_DTYPE
    cdt_bytes = np.dtype(cdt).itemsize

    # Trace-time constant projection matrices per scale (pad + blur + ::stride folded in).
    geoms, weights = [], []
    for s in scales:
        Ho, Dv = _projection_matrix(H, s)
        Wo, Dh = _projection_matrix(W, s)
        geoms.append((Ho, Wo))
        weights.append(jnp.asarray(Dv, cdt))         # (Ho, H)
        weights.append(jnp.asarray(Dh.T, cdt))       # (W, Wo)

    Cb, nc_pad = _plan_blocking(nc, H, W, geoms,
                                in_bytes=x.dtype.itemsize,
                                out_bytes=x.dtype.itemsize,
                                cdt_bytes=cdt_bytes)

    xf = x.reshape(nc, H, W)
    if nc_pad != nc:
        # A pad copy is unavoidable here, so fuse the bf16 cast into it (halves the
        # kernel-side HBM read).  Without padding x stays f32 in HBM and is cast on-chip.
        xf = jnp.pad(xf.astype(cdt), ((0, nc_pad - nc), (0, 0), (0, 0)))

    n_scales = len(geoms)
    in_specs = [pl.BlockSpec((Cb, H, W), lambda i: (i, 0, 0))]
    for Ho, Wo in geoms:
        in_specs.append(pl.BlockSpec((Ho, H), lambda i: (0, 0)))
        in_specs.append(pl.BlockSpec((W, Wo), lambda i: (0, 0)))

    out_shape = tuple(jax.ShapeDtypeStruct((nc_pad, Ho, Wo), x.dtype) for Ho, Wo in geoms)
    out_specs = tuple(pl.BlockSpec((Cb, Ho, Wo), lambda i: (i, 0, 0)) for Ho, Wo in geoms)

    outs = pl.pallas_call(
        _make_kernel(n_scales, Cb, H, cdt),
        out_shape=out_shape,
        grid=(nc_pad // Cb,),
        in_specs=in_specs,
        out_specs=out_specs,
        compiler_params=pltpu.CompilerParams(
            dimension_semantics=("parallel",),
            vmem_limit_bytes=_vmem_limit_bytes(),
        ),
    )(xf, *weights)

    results = []
    for o, (Ho, Wo) in zip(outs, geoms):
        if nc_pad != nc:
            o = o[:nc]
        results.append(o.reshape(N, C, Ho, Wo))
    return tuple(results)


class ImagePyramide:
    """JAX/Pallas port of LIA_encoder.vgg19.ImagePyramide (forward pass)."""

    def __init__(self, scales, num_channels):
        self.scales = list(scales)
        self.num_channels = num_channels             # parity with the torch module

    def __call__(self, x):
        keys = ["prediction_" + str(s).replace("-", ".") for s in self.scales]
        nz = tuple(float(s) for s in self.scales if float(s) != 1.0)
        outs = list(_pyramid_downsample(x, nz)) if nz else []
        out_dict, oi = {}, 0
        for s, k in zip(self.scales, keys):
            if float(s) == 1.0:
                out_dict[k] = x                      # identity scale: exact pass-through
            else:
                out_dict[k] = outs[oi]
                oi += 1
        return out_dict


def _reference(x, scale):
    """Independent f32 shift-and-add reference (pad + depthwise conv + ::s subsample)."""
    if scale == 1.0:
        return x
    K, ka, stride, g = _gaussian_taps(scale)
    w2d = np.outer(g, g)
    N, C, H, W = x.shape
    xp = jnp.pad(x, ((0, 0), (0, 0), (ka, ka), (ka, ka)))
    acc = jnp.zeros((N, C, H, W), jnp.float32)
    for dy in range(K):
        for dx in range(K):
            acc = acc + np.float32(w2d[dy, dx]) * xp[:, :, dy:dy + H, dx:dx + W]
    return acc[:, :, ::stride, ::stride]


if __name__ == "__main__":
    key = jax.random.PRNGKey(0)
    N, C, H, W = 2, 4, 16, 16
    x = jax.random.normal(key, (N, C, H, W), dtype=jnp.float32)

    pyramide = ImagePyramide(scales=[1, 0.5, 0.25], num_channels=C)
    out = pyramide(x)
    for k in sorted(out):
        jax.block_until_ready(out[k])

    # Shape sanity (stride = int(1/scale)).
    assert out["prediction_1"].shape == (N, C, H, W)
    assert out["prediction_0.5"].shape == (N, C, H // 2, W // 2)
    assert out["prediction_0.25"].shape == (N, C, H // 4, W // 4)

    # Identity scale is exact pass-through.
    assert bool(jnp.all(out["prediction_1"] == x))

    # Numerical check vs. the independent f32 shift-and-add reference.  Tolerance covers
    # the intentional bf16 MXU feed (activations + blur weights + intermediate), whose
    # expected max abs error on N(0,1) inputs is ~1e-2.
    for s in (0.5, 0.25):
        ref = _reference(x, s)
        got = out["prediction_" + str(s)]
        err = float(jnp.max(jnp.abs(got - ref)))
        assert err < 5e-2, f"scale {s}: max abs err {err}"

    print("KERNEL_OK")
</pallas_src>

<mosaic_0001>
module attributes {stable_mosaic.version = 11 : i64} {
  func.func @kernel(%arg0: i32, %arg1: memref<4x16x16xf32, #tpu.memory_space<vmem>>, %arg2: memref<8x16xbf16, #tpu.memory_space<vmem>>, %arg3: memref<16x8xbf16, #tpu.memory_space<vmem>>, %arg4: memref<4x16xbf16, #tpu.memory_space<vmem>>, %arg5: memref<16x4xbf16, #tpu.memory_space<vmem>>, %arg6: memref<4x8x8xf32, #tpu.memory_space<vmem>>, %arg7: memref<4x4x4xf32, #tpu.memory_space<vmem>>) attributes {dimension_semantics = [#tpu.dimension_semantics<parallel>], iteration_bounds = array<i64: 2>, scalar_prefetch = 0 : i64, scratch_operands = 0 : i64, tpu.core_type = #tpu.core_type<tc>, window_params = [{transform_indices = @transform_0, window_bounds = array<i64: 4, 16, 16>}, {pipeline_mode = #tpu.pipeline_mode<synchronous>, transform_indices = @transform_1, window_bounds = array<i64: 8, 16>}, {pipeline_mode = #tpu.pipeline_mode<synchronous>, transform_indices = @transform_2, window_bounds = array<i64: 16, 8>}, {pipeline_mode = #tpu.pipeline_mode<synchronous>, transform_indices = @transform_3, window_bounds = array<i64: 4, 16>}, {pipeline_mode = #tpu.pipeline_mode<synchronous>, transform_indices = @transform_4, window_bounds = array<i64: 16, 4>}, {transform_indices = @transform_5, window_bounds = array<i64: 4, 8, 8>}, {transform_indices = @transform_6, window_bounds = array<i64: 4, 4, 4>}]} {
    %c0 = arith.constant 0 : index
    %c0_0 = arith.constant 0 : index
    %c0_1 = arith.constant 0 : index
    %0 = vector.load %arg1[%c0, %c0_0, %c0_1] : memref<4x16x16xf32, #tpu.memory_space<vmem>>, vector<4x16x16xf32>
    %1 = arith.truncf %0 : vector<4x16x16xf32> to vector<4x16x16xbf16>
    %2 = vector.shape_cast %1 : vector<4x16x16xbf16> to vector<64x16xbf16>
    %c0_2 = arith.constant 0 : index
    %c0_3 = arith.constant 0 : index
    %3 = vector.load %arg2[%c0_2, %c0_3] : memref<8x16xbf16, #tpu.memory_space<vmem>>, vector<8x16xbf16>
    %c0_4 = arith.constant 0 : index
    %c0_5 = arith.constant 0 : index
    %4 = vector.load %arg3[%c0_4, %c0_5] : memref<16x8xbf16, #tpu.memory_space<vmem>>, vector<16x8xbf16>
    %cst = arith.constant dense<0.000000e+00> : vector<64x8xf32>
    %5 = tpu.matmul %2, %4, %cst {dimension_numbers = #tpu.dot_dimension_numbers<[1], [0], [0], [1], [0, 0, 1, 1], [], []>} : vector<64x16xbf16>, vector<16x8xbf16>, vector<64x8xf32> -> vector<64x8xf32>
    %6 = vector.shape_cast %5 : vector<64x8xf32> to vector<4x16x8xf32>
    %7 = arith.truncf %6 : vector<4x16x8xf32> to vector<4x16x8xbf16>
    %8 = vector.shape_cast %3 : vector<8x16xbf16> to vector<1x8x16xbf16>
    %9 = vector.shape_cast %8 : vector<1x8x16xbf16> to vector<1x8x16xbf16>
    %10 = vector.broadcast %9 : vector<1x8x16xbf16> to vector<4x8x16xbf16>
    %cst_6 = arith.constant dense<0.000000e+00> : vector<4x8x8xf32>
    %11 = tpu.matmul %10, %7, %cst_6 {dimension_numbers = #tpu.dot_dimension_numbers<[2], [1], [1], [2], [0, 0, 0, 1, 1, 2], [0], [0]>} : vector<4x8x16xbf16>, vector<4x16x8xbf16>, vector<4x8x8xf32> -> vector<4x8x8xf32>
    %c0_7 = arith.constant 0 : index
    %c0_8 = arith.constant 0 : index
    %c0_9 = arith.constant 0 : index
    %12 = vector.load %arg6[%c0_7, %c0_8, %c0_9] : memref<4x8x8xf32, #tpu.memory_space<vmem>>, vector<4x8x8xf32>
    tpu.vector_store %arg6[%c0_7, %c0_8, %c0_9], %11 {strides = array<i32>} : memref<4x8x8xf32, #tpu.memory_space<vmem>>, vector<4x8x8xf32>,
    %c0_10 = arith.constant 0 : index
    %c0_11 = arith.constant 0 : index
    %13 = vector.load %arg4[%c0_10, %c0_11] : memref<4x16xbf16, #tpu.memory_space<vmem>>, vector<4x16xbf16>
    %c0_12 = arith.constant 0 : index
    %c0_13 = arith.constant 0 : index
    %14 = vector.load %arg5[%c0_12, %c0_13] : memref<16x4xbf16, #tpu.memory_space<vmem>>, vector<16x4xbf16>
    %cst_14 = arith.constant dense<0.000000e+00> : vector<64x4xf32>
    %15 = tpu.matmul %2, %14, %cst_14 {dimension_numbers = #tpu.dot_dimension_numbers<[1], [0], [0], [1], [0, 0, 1, 1], [], []>} : vector<64x16xbf16>, vector<16x4xbf16>, vector<64x4xf32> -> vector<64x4xf32>
    %16 = vector.shape_cast %15 : vector<64x4xf32> to vector<4x16x4xf32>
    %17 = arith.truncf %16 : vector<4x16x4xf32> to vector<4x16x4xbf16>
    %18 = vector.shape_cast %13 : vector<4x16xbf16> to vector<1x4x16xbf16>
    %19 = vector.shape_cast %18 : vector<1x4x16xbf16> to vector<1x4x16xbf16>
    %20 = vector.broadcast %19 : vector<1x4x16xbf16> to vector<4x4x16xbf16>
    %cst_15 = arith.constant dense<0.000000e+00> : vector<4x4x4xf32>
    %21 = tpu.matmul %20, %17, %cst_15 {dimension_numbers = #tpu.dot_dimension_numbers<[2], [1], [1], [2], [0, 0, 0, 1, 1, 2], [0], [0]>} : vector<4x4x16xbf16>, vector<4x16x4xbf16>, vector<4x4x4xf32> -> vector<4x4x4xf32>
    %c0_16 = arith.constant 0 : index
    %c0_17 = arith.constant 0 : index
    %c0_18 = arith.constant 0 : index
    %22 = vector.load %arg7[%c0_16, %c0_17, %c0_18] : memref<4x4x4xf32, #tpu.memory_space<vmem>>, vector<4x4x4xf32>
    tpu.vector_store %arg7[%c0_16, %c0_17, %c0_18], %21 {strides = array<i32>} : memref<4x4x4xf32, #tpu.memory_space<vmem>>, vector<4x4x4xf32>,
    return
  }
  func.func @transform_0(%arg0: i32) -> (i32, i32, i32) {
    %c0_i32 = arith.constant 0 : i32
    %c0_i32_0 = arith.constant 0 : i32
    %c0_i32_1 = arith.constant 0 : i32
    return %arg0, %c0_i32, %c0_i32_0 : i32, i32, i32
  }
  func.func @transform_1(%arg0: i32) -> (i32, i32) {
    %c0_i32 = arith.constant 0 : i32
    %c0_i32_0 = arith.constant 0 : i32
    %c0_i32_1 = arith.constant 0 : i32
    return %c0_i32, %c0_i32_0 : i32, i32
  }
  func.func @transform_2(%arg0: i32) -> (i32, i32) {
    %c0_i32 = arith.constant 0 : i32
    %c0_i32_0 = arith.constant 0 : i32
    %c0_i32_1 = arith.constant 0 : i32
    return %c0_i32, %c0_i32_0 : i32, i32
  }
  func.func @transform_3(%arg0: i32) -> (i32, i32) {
    %c0_i32 = arith.constant 0 : i32
    %c0_i32_0 = arith.constant 0 : i32
    %c0_i32_1 = arith.constant 0 : i32
    return %c0_i32, %c0_i32_0 : i32, i32
  }
  func.func @transform_4(%arg0: i32) -> (i32, i32) {
    %c0_i32 = arith.constant 0 : i32
    %c0_i32_0 = arith.constant 0 : i32
    %c0_i32_1 = arith.constant 0 : i32
    return %c0_i32, %c0_i32_0 : i32, i32
  }
  func.func @transform_5(%arg0: i32) -> (i32, i32, i32) {
    %c0_i32 = arith.constant 0 : i32
    %c0_i32_0 = arith.constant 0 : i32
    %c0_i32_1 = arith.constant 0 : i32
    return %arg0, %c0_i32, %c0_i32_0 : i32, i32, i32
  }
  func.func @transform_6(%arg0: i32) -> (i32, i32, i32) {
    %c0_i32 = arith.constant 0 : i32
    %c0_i32_0 = arith.constant 0 : i32
    %c0_i32_1 = arith.constant 0 : i32
    return %arg0, %c0_i32, %c0_i32_0 : i32, i32, i32
  }
}

</mosaic_0001>

<bundles_post_ra>
// kernel: _pyramid_downsample.1
= control target key start
LH: loop header
LB: loop body
LE: loop exit
PB: predicated region body
PF: predicated region fallthrough
CT: control target
= control target key end

     0   :  { %12 = vsyncpa [#allocation3], 0  ;;  %s1799_s0 = inlined_call_operand.hbm [shape: f32[8,16,16], index: 0, kind: input, shape index: {}]   ;;  %s1800_s1 = inlined_call_operand.hbm [shape: bf16[8,16], index: 1, kind: input, shape index: {}]   ;;  %s1801_s2 = inlined_call_operand.hbm [shape: bf16[16,8], index: 2, kind: input, shape index: {}]   ;;  %s1802_s3 = inlined_call_operand.hbm [shape: bf16[4,16], index: 3, kind: input, shape index: {}]   ;;  %s1803_s4 = inlined_call_operand.vmem [shape: bf16[16,4], index: 4, kind: input, shape index: {}]   ;;  %s1804_s5 = inlined_call_operand.hbm [shape: f32[8,8,8], index: 5, kind: output, shape index: {0}]   ;;  %s1805_s6 = inlined_call_operand.hbm [shape: f32[8,4,4], index: 6, kind: output, shape index: {1}]  }
   0x1   :  { %14 = vsyncpa [#allocation3 + $0x1], 0 }
   0x2   :  { %15 = vsyncpa [#allocation6], 0 }
   0x3   :  { %16 = vsyncpa [#allocation9], 0 }
   0x4   :  { %17 = vsyncpa [#allocation4], 0 }
   0x5   :  { %19 = vsyncpa [#allocation4 + $0x1], 0 }
   0x6   :  { %20 = vsyncpa [#allocation12], 0 }
   0x7   :  { %22 = vsyncpa [#allocation12 + $0x1], 0  ;;  %s1508_s21 = smov 0   ;;  %s1510_s22 = smov 0  }
   0x8   :  { %s1512_s23 = smov 0   ;;  %s1514_s24 = smov 0  }
   0x9 LB: > { %s1529_s25 = sadd.s32 4294967295, %s1455_s24   ;;  %s1012_s26 = sadd.s32 4294967294, %s1455_s24   ;;  %s1455_s24 = sphi %s1514_s24, %s1829_s24   ;;  %s1451_s23 = sphi %s1512_s23, %s1828_s23   ;;  %s1447_s22 = sphi %s1510_s22, %s1827_s22   ;;  %s1443_s21 = sphi %s1508_s21, %s1826_s21  }
   0xa   : > { %p48_p0 = scmp.ne.s32.totalorder %s1447_s22, %s1443_s21  ;;  %p1806_p1 = scmp.eq.s32.totalorder %s1529_s25, 0 }
   0xb   : > { %p162_p3 = scmp.eq.s32.totalorder %s1012_s26, 1  ;;  %p1013_p5 = scmp.ge.s32.totalorder %s1455_s24, 1 }
   0xc   : > { %p1538_p4 = por %p1806_p1, %p48_p0  ;;  %p195_p7 = scmp.lt.s32.totalorder %s1455_s24, 3 }
   0xd   : > { %p1543_p6 = por %p162_p3, %p48_p0  ;;  %s1457_s30 = smov [#allocation5]  }
   0xe   : > { %s1810_s27 = scalar_select %p1538_p4, 1, 0 }
   0xf   : > { %s1811_s28 = scalar_select %p1543_p6, 1, 0 }
  0x10   : > { %p1548_p8 = pnand %p1013_p5, %p195_p7  ;;  %s208_s7 = sshll.u32 %s1457_s30, 4  ;;  %s209_s7 = int_to_ptr.vmem [resolvable:$true] %s208_s7 }
  0x11   : > { %s1458_s8 = smov [#allocation7]   ;;  %s1459_s11 = smov [#allocation8]  }
  0x12   : > { %s1812_s29 = scalar_select %p1548_p8, 1, 0 }
  0x13   : > { %p1171_p10 = pneg %p1548_p8  ;;  %s218_s9 = sshll.u32 %s1458_s8, 4  ;;  %s219_s9 = int_to_ptr.vmem [resolvable:$true] %s218_s9 }
  0x14   : > { %s232_s12 = sshll.u32 %s1459_s11, 4  ;;  %s1258_s13 = scalar_lea.vmem %s209_s7, 64  ;;  %s233_s12 = int_to_ptr.vmem [resolvable:$true] %s232_s12 }
  0x15   : > { %p1557_p11 = pnand %p1171_p10, %p1806_p1  ;;  %p1259_p13 = scmp.ne.s32.totalorder %s209_s7, %s1258_s13 }
  0x16   : > { %p1266_p5 = scmp.lt.s32.totalorder %s209_s7, %s209_s7  ;;  %p1267_p7 = scmp.lt.s32.totalorder %s1258_s13, %s1258_s13 }
  0x17   : > { %p1249_p12 = pneg %p1557_p11 }
  0x18   : > { %p1268_p9 = por %p1267_p7, %p1266_p5 }
  0x19   : > { %p1261_p0 = pnand %p1259_p13, %p1249_p12 }
  0x1b   : > { %p1262_p3 = pneg %p1261_p0 }
  0x1d   : > { %p1269_p10 = pnand %p1268_p9, %p1262_p3 }
  0x1f   : > { %1272 = shalt.err (!%p1269_p10)
}
  0x20   : > { %1174 = dma.hbm_to_vmem [thread:$0]  (!%p1557_p11), %s1800_s1, 64, %s209_s7, [#allocation6]  }
  0x21   : > { %s1284_s16 = scalar_lea.vmem %s219_s9, 128  ;;  %p1292_p13 = scmp.lt.s32.totalorder %s219_s9, %s219_s9 }
  0x22   : > { %p1285_p1 = scmp.ne.s32.totalorder %s219_s9, %s1284_s16  ;;  %p1293_p0 = scmp.lt.s32.totalorder %s1284_s16, %s1284_s16 }
  0x24   : > { %p1287_p2 = pnand %p1285_p1, %p1249_p12  ;;  %p1294_p4 = por %p1293_p0, %p1292_p13 }
  0x26   : > { %p1288_p6 = pneg %p1287_p2 }
  0x28   : > { %p1295_p8 = pnand %p1294_p4, %p1288_p6 }
  0x2a   : > { %1298 = shalt.err (!%p1295_p8)
}
  0x2b   : > { %s1460_s17 = smov 64   ;;  %s1461_s18 = smov 4  }
  0x2c   : > { %1177 = dma.hbm_to_vmem [thread:$0]  (!%p1557_p11), %s1801_s2, 128, %s219_s9, [#allocation6], %s1460_s17, %s1460_s17, %s1461_s18  }
  0x2d   : > { %s1310_s26 = scalar_lea.vmem %s233_s12, 32  ;;  %p1318_p3 = scmp.lt.s32.totalorder %s233_s12, %s233_s12 }
  0x2e   : > { %p1311_p9 = scmp.ne.s32.totalorder %s233_s12, %s1310_s26  ;;  %p1319_p5 = scmp.lt.s32.totalorder %s1310_s26, %s1310_s26 }
  0x30   : > { %p1313_p1 = pnand %p1311_p9, %p1249_p12  ;;  %p1320_p4 = por %p1319_p5, %p1318_p3 }
  0x32   : > { %p1314_p2 = pneg %p1313_p1 }
  0x34   : > { %p1321_p6 = pnand %p1320_p4, %p1314_p2 }
  0x36   : > { %1324 = shalt.err (!%p1321_p6)
}
  0x37   : > { %1180 = dma.hbm_to_vmem [thread:$0]  (!%p1557_p11), %s1802_s3, 32, %s233_s12, [#allocation9]  }
  0x38   : > { %s1588_s8 = sadd.s32 1, %s1455_s24   ;;  %s35_s10 = sadd.s32 1, %s1451_s23 }
  0x39   : > { %s32_s9 = ssub.s32 %s1455_s24, %s1588_s8  ;;  %p42_p12 = scmp.ne.s32.totalorder %s1451_s23, %s1447_s22 }
  0x3a   : > { %p33_p8 = scmp.eq.s32.totalorder %s32_s9, 0  ;;  %p43_p7 = scmp.eq.s32.totalorder %s1455_s24, 0 }
  0x3b   : > { %p1195_p10 = scmp.lt.s32.totalorder %s1455_s24, 2  ;;  %p1814_p0 = scmp.eq.s32.totalorder %s1529_s25, 1 }
  0x3c   : > { %s1598_s11 = scalar_select %p33_p8, %s1451_s23, %s35_s10  }
  0x3d   : > { %p44_p13 = por %p43_p7, %p42_p12  ;;  %p1602_p9 = por %p1814_p0, %p42_p12 }
  0x3e   : > { %s246_s14 = sand.u32 1, %s1451_s23   ;;  %s1056_s15 = sshll.u32 %s1455_s24, 10 }
  0x3f   : > { %s1815_s13 = scalar_select %p1602_p9, 1, 0 }
  0x40   : > { %s1018_s12 = sshll.u32 %s246_s14, 6  ;;  %s1611_s18 = scalar_lea.hbm %s1799_s0, %s1056_s15 }
  0x41   : > { %s250_s19 = scalar_lea.vmem [#allocation2], %s1018_s12  ;;  %p1613_p11 = pnand %p1195_p10, %p44_p13 }
  0x42   : > { %s258_s20 = sshll.u32 %s250_s19, 4  ;;  %s1619_s30 = scalar_lea.sflag [#allocation3], %s246_s14  ;;  %s1617_s20 = int_to_ptr.vmem [resolvable:$true] %s258_s20 }
  0x43   : > { %s1325_s7 = scalar_lea.hbm %s1611_s18, 1024  ;;  %p1327_p2 = pneg %p1613_p11 }
  0x44   : > { %p1326_p1 = scmp.ne.s32.totalorder %s1611_s18, %s1325_s7  ;;  %s1330_s15 = scalar_lea.hbm %s1799_s0, 2048 }
  0x45   : > { %p1331_p4 = scmp.lt.s32.totalorder %s1611_s18, %s1799_s0  ;;  %p1332_p6 = scmp.lt.s32.totalorder %s1330_s15, %s1325_s7 }
  0x46   : > { %p1328_p3 = pnand %p1327_p2, %p1326_p1 }
  0x47   : > { %p1333_p8 = por %p1332_p6, %p1331_p4 }
  0x48   : > { %p1329_p5 = pneg %p1328_p3 }
  0x4a   : > { %p1334_p12 = pnand %p1333_p8, %p1329_p5 }
  0x4c   : > { %1337 = shalt.err (!%p1334_p12)
}
  0x4d   : > { %s1338_s14 = scalar_lea.vmem %s1617_s20, 1024  ;;  %s1462_s17 = smov [#allocation2]  }
  0x4e   : > { %p1339_p7 = scmp.ne.s32.totalorder %s1617_s20, %s1338_s14  ;;  %s1343_s19 = sshll.u32 %s1462_s17, 4  ;;  %s1344_s19 = int_to_ptr.vmem [resolvable:$false] %s1343_s19 }
  0x4f   : > { %s1345_s9 = scalar_lea.vmem %s1344_s19, 2048  ;;  %p1346_p0 = scmp.lt.s32.totalorder %s1617_s20, %s1344_s19 }
  0x50   : > { %p1341_p10 = pnand %p1339_p7, %p1327_p2  ;;  %p1347_p1 = scmp.lt.s32.totalorder %s1345_s9, %s1338_s14 }
  0x52   : > { %p1342_p13 = pneg %p1341_p10  ;;  %p1348_p3 = por %p1347_p1, %p1346_p0 }
  0x54   : > { %p1349_p9 = pnand %p1348_p3, %p1342_p13 }
  0x56   : > { %1352 = shalt.err (!%p1349_p9)
}
  0x57   : > { %s1463_s7 = smov 128   ;;  %s1464_s10 = smov 8  }
  0x58   : > { %1184 = dma.hbm_to_vmem [thread:$0]  (!%p1613_p11), %s1611_s18, 1024, %s1617_s20, %s1619_s30, %s1463_s7, %s1463_s7, %s1464_s10  }
  0x59   : > { %p1817_p2 = scmp.ne.s32.totalorder %s1812_s29, 0 }
  0x5a   : > { %s1643_s15 = sand.u32 (!%p1817_p2), 1, %s1447_s22   ;;  %p1818_p9 = scmp.ne.s32.totalorder (!%p1817_p2), %s1810_s27, 0 }
  0x5b   : > { %270 = sbr.rel (%p1817_p2) target bundleno = 757 (0x2f5), region = 40  ;;  %s1023_s12 = sshll.u32 (!%p1817_p2), %s1643_s15, 6 }
  0x5c   : > { %s273_s16 = scalar_lea.sflag (!%p1817_p2), [#allocation3], %s1643_s15  ;;  %s276_s14 = scalar_lea.vmem (!%p1817_p2), [#allocation2], %s1023_s12 }
  0x60   : > { %1422 = dma.done.wait (%p1818_p9), %s273_s16, 1024  }
  0x61   : > { %1424 = vsyncadd (%p1818_p9), %s273_s16, 4294966272  ;;  %p1819_p5 = scmp.eq.s32.totalorder %s1529_s25, 0 }
  0x63   : > { %1426 = dma.done.wait (%p1819_p5), [#allocation6], 192   ;;  %p1820_p11 = pmov %p1819_p5 }
  0x64   : > { %p1821_p4 = pmov %p1819_p5 }
  0x65   : > { %1428 = vsyncadd (%p1820_p11), [#allocation6], 4294967104 }
  0x66   : > { %1430 = dma.done.wait (%p1821_p4), [#allocation9], 32   ;;  %p1822_p6 = pmov %p1821_p4 }
  0x67   : > { %v1245_v0 = vld [vmem:[#allocation7] sm:$0xff]   ;;  %vm347_vm0 = vcmask 130048   ;;  %v328_v3 = vld [vmem:[%s276_s14 + $0x10] sm:$0xff]  ;;  %v329_v5 = vld [vmem:[%s276_s14 + $0x18] sm:$0xff]  ;;  %v1465_v13 = vmov 0.0   ;;  %vm1466_vm1 = vmmov 0  }
  0x68   : > { %1432 = vsyncadd (%p1822_p6), [#allocation9], 4294967264  ;;  %v326_v1 = vld [vmem:[%s276_s14] sm:$0xff]  ;;  %v327_v2 = vld [vmem:[%s276_s14 + $0x8] sm:$0xff]  ;;  %1085 = vmatprep.subr.bf16.mxu0 %v1245_v0  ;;  %v335_v8 = vpack.c.bf16 %v329_v5, %v328_v3  ;;  %1095 = vmatprep.subr.bf16.mxu1 %v1465_v13  ;;  %s1027_s18 = sshll.u32 %s1643_s15, 5  ;;  %vm592_vm2 = vcmask 64512  }
  0x69   : > { %v334_v4 = vpack.c.bf16 %v327_v2, %v326_v1  ;;  %v330_v6 = vld [vmem:[%s276_s14 + $0x20] sm:$0xff]  ;;  %v331_v7 = vld [vmem:[%s276_s14 + $0x28] sm:$0xff]  ;;  %1086 = vmatpush3.bf16.msra.mxu0 %v1245_v0  ;;  %v332_v10 = vld [vmem:[%s276_s14 + $0x30] sm:$0xff]  ;;  %1097 = vmatprep.mubr.msk.bf16.mxu1 %vm1466_vm1, %v1465_v13  ;;  %s1693_s20 = scalar_lea.vmem [#allocation10], %s1027_s18  ;;  %s1057_s30 = sshll.u32 %s1529_s25, 9 }
  0x6a   : > { %v336_v9 = vpack.c.bf16 %v331_v7, %v330_v6  ;;  %v333_v11 = vld [vmem:[%s276_s14 + $0x38] sm:$0xff]  ;;  %1107 = vmatprep.subr.bf16.mxu0 %v1465_v13  ;;  %v338_v20 = vld [vmem:[#allocation5] sm:$0xf]  ;;  %v597_v50 = vld [vmem:[#allocation8] sm:$0x3]  ;;  %s862_s26 = sshll.u32 %s1693_s20, 4  ;;  %s1720_s9 = scalar_lea.hbm %s1804_s5, %s1057_s30  ;;  %s1714_s26 = int_to_ptr.vmem [resolvable:$true] %s862_s26 }
  0x6b   : > { %1087 = vmatprep.mubr.msk.bf16.mxu0 %vm347_vm0, %v334_v4  ;;  %v337_v12 = vpack.c.bf16 %v333_v11, %v332_v10  ;;  %v1246_v25 = vld [vmem:[%s1803_s4] sm:$0xff]   ;;  %s844_s7 = scalar_lea.sflag [#allocation4], %s1643_s15  ;;  %s1353_s10 = scalar_lea.vmem %s1714_s26, 512 }
  0x6c   : > { %1088 = vmatmul.mubr.msk.bf16.vlgmr.msra.gmra.mxu0 %vm347_vm0, %v335_v8  ;;  %p1354_p8 = scmp.ne.s32.totalorder %s1714_s26, %s1353_s10  ;;  %p1823_p12 = scmp.ne.s32.totalorder %s1815_s13, 0 }
  0x6d   : > { %1091 = vmatprep.mubr.msk.bf16.mxu0 %vm347_vm0, %v336_v9  ;;  %s1467_s12 = smov [#allocation10]  }
  0x6e   : > { %p1355_p7 = pnand %p1354_p8, %p1823_p12  ;;  %s1357_s16 = sshll.u32 %s1467_s12, 4  ;;  %s1358_s16 = int_to_ptr.vmem [resolvable:$false] %s1357_s16 }
  0x6f   : > { %s1359_s14 = scalar_lea.vmem %s1358_s16, 1024  ;;  %p1360_p13 = scmp.lt.s32.totalorder %s1714_s26, %s1358_s16 }
  0x70   : > { %p1356_p10 = pneg %p1355_p7  ;;  %p1361_p0 = scmp.lt.s32.totalorder %s1359_s14, %s1353_s10 }
  0x72   : > { %p1362_p1 = por %p1361_p0, %p1360_p13 }
  0x74   : > { %1092 = vmatmul.mubr.msk.bf16.gmra.mxu0 %vm347_vm0, %v337_v12  ;;  %p1363_p3 = pnand %p1362_p1, %p1356_p10 }
  0x75   : > { %1109 = vmatprep.mubr.msk.bf16.mxu0 %vm1466_vm1, %v1465_v13 }
 0x12c   : > { %v1089_v14 = vpop.f32.mrf.mxu0 }
 0x12e   : > { %v394_v15 = vpop.f32.mrf.mxu0 }
 0x130   : > { %v1090_v16 = vpop.f32.mrf.mxu0 }
 0x131   : > { %v426_v22 = vpack.c.bf16 %v1090_v16, %v1089_v14 }
 0x132   : > { %v397_v17 = vpop.f32.mrf.mxu0 }
 0x133   : > { %v425_v18 = vpack.c.bf16 %v397_v17, %v394_v15 }
 0x134   : > { %v1093_v19 = vpop.f32.mrf.mxu0 }
 0x135   : > { %1096 = vmatpush3.bf16.msra.mxu1 %v425_v18 }
 0x136   : > { %v410_v21 = vpop.f32.mrf.mxu0  ;;  %1101 = vmatprep.subr.bf16.mxu1 %v1465_v13 }
 0x138   : > { %v1094_v23 = vpop.f32.mrf.mxu0  ;;  %1098 = vmatmul.mubr.msk.bf16.vlgmr.msra.gmra.mxu1 %vm347_vm0, %v338_v20 }
 0x139   : > { %1102 = vmatpush3.bf16.msra.mxu1 %v426_v22  ;;  %1103 = vmatprep.mubr.msk.bf16.mxu1 %vm1466_vm1, %v1465_v13  ;;  %v428_v27 = vpack.c.bf16 %v1094_v23, %v1093_v19 }
 0x13a   : > { %v413_v24 = vpop.f32.mrf.mxu0  ;;  %1113 = vmatprep.subr.bf16.mxu1 %v1465_v13 }
 0x13b   : > { %v427_v26 = vpack.c.bf16 %v413_v24, %v410_v21 }
 0x13d   : > { %1108 = vmatpush3.bf16.msra.mxu0 %v427_v26 }
 0x13e   : > { %1119 = vmatprep.subr.bf16.mxu0 %v1246_v25 }
 0x140   : > { %1104 = vmatmul.mubr.msk.bf16.vlgmr.msra.gmra.mxu1 %vm347_vm0, %v338_v20  ;;  %1110 = vmatmul.mubr.msk.bf16.vlgmr.msra.gmra.mxu0 %vm347_vm0, %v338_v20 }
 0x141   : > { %1114 = vmatpush3.bf16.msra.mxu1 %v428_v27  ;;  %1120 = vmatpush3.bf16.msra.mxu0 %v1246_v25 }
 0x142   : > { %1121 = vmatprep.mubr.msk.bf16.mxu0 %vm347_vm0, %v334_v4  ;;  %1115 = vmatprep.mubr.msk.bf16.mxu1 %vm1466_vm1, %v1465_v13 }
 0x143   : > { %1129 = vmatprep.subr.bf16.mxu1 %v1465_v13  ;;  %1141 = vmatprep.subr.bf16.mxu0 %v1465_v13 }
 0x148   : > { %1122 = vmatmul.mubr.msk.bf16.vlgmr.msra.gmra.mxu0 %vm347_vm0, %v335_v8  ;;  %1116 = vmatmul.mubr.msk.bf16.vlgmr.msra.gmra.mxu1 %vm347_vm0, %v338_v20 }
 0x149   : > { %1125 = vmatprep.mubr.msk.bf16.mxu0 %vm347_vm0, %v336_v9  ;;  %1131 = vmatprep.mubr.msk.bf16.mxu1 %vm1466_vm1, %v1465_v13 }
 0x150   : > { %1126 = vmatmul.mubr.msk.bf16.gmra.mxu0 %vm347_vm0, %v337_v12 }
 0x151   : > { %1143 = vmatprep.mubr.msk.bf16.mxu0 %vm1466_vm1, %v1465_v13 }
 0x1f8   : > { %v466_v28 = vpop.f32.mrf.mxu1 }
 0x1f9   : > { %593 = vst.msk [vmem:[%s1693_s20] sm:$0xff] %vm592_vm2, %v466_v28 }
 0x1fa   : > { %v1099_v29 = vpop.f32.mrf.mxu1 }
 0x1fc   : > { %v469_v30 = vpop.f32.mrf.mxu1 }
 0x1fe   : > { %v1100_v31 = vpop.f32.mrf.mxu1 }
 0x200   : > { %v546_v32 = vpop.f32.mrf.mxu0  ;;  %v506_v33 = vpop.f32.mrf.mxu1 }
 0x201   : > { %595 = vst.msk [vmem:[%s1693_s20 + $0x10] sm:$0xff] %vm592_vm2, %v546_v32  ;;  %594 = vst.msk [vmem:[%s1693_s20 + $0x8] sm:$0xff] %vm592_vm2, %v506_v33 }
 0x202   : > { %v1111_v34 = vpop.f32.mrf.mxu0  ;;  %v1105_v35 = vpop.f32.mrf.mxu1 }
 0x204   : > { %v549_v36 = vpop.f32.mrf.mxu0  ;;  %v509_v37 = vpop.f32.mrf.mxu1 }
 0x206   : > { %v1112_v38 = vpop.f32.mrf.mxu0  ;;  %v1106_v39 = vpop.f32.mrf.mxu1 }
 0x208   : > { %v1123_v40 = vpop.f32.mrf.mxu0  ;;  %v586_v41 = vpop.f32.mrf.mxu1 }
 0x209   : > { %596 = vst.msk [vmem:[%s1693_s20 + $0x18] sm:$0xff] %vm592_vm2, %v586_v41 }
 0x20a   : > { %v640_v42 = vpop.f32.mrf.mxu0  ;;  %v1117_v43 = vpop.f32.mrf.mxu1 }
 0x20c   : > { %v1124_v44 = vpop.f32.mrf.mxu0  ;;  %v589_v45 = vpop.f32.mrf.mxu1 }
 0x20d   : > { %v672_v52 = vpack.c.bf16 %v1124_v44, %v1123_v40 }
 0x20e   : > { %v643_v46 = vpop.f32.mrf.mxu0  ;;  %v1118_v47 = vpop.f32.mrf.mxu1 }
 0x20f   : > { %v671_v48 = vpack.c.bf16 %v643_v46, %v640_v42 }
 0x210   : > { %v1127_v49 = vpop.f32.mrf.mxu0 }
 0x211   : > { %1130 = vmatpush3.bf16.msra.mxu1 %v671_v48 }
 0x212   : > { %v656_v51 = vpop.f32.mrf.mxu0  ;;  %1135 = vmatprep.subr.bf16.mxu1 %v1465_v13 }
 0x214   : > { %1132 = vmatmul.mubr.msk.bf16.vlgmr.msra.gmra.mxu1 %vm347_vm0, %v597_v50  ;;  %v1128_v53 = vpop.f32.mrf.mxu0 }
 0x215   : > { %1136 = vmatpush3.bf16.msra.mxu1 %v672_v52  ;;  %1137 = vmatprep.mubr.msk.bf16.mxu1 %vm1466_vm1, %v1465_v13  ;;  %v674_v56 = vpack.c.bf16 %v1128_v53, %v1127_v49 }
 0x216   : > { %v659_v54 = vpop.f32.mrf.mxu0  ;;  %1147 = vmatprep.subr.bf16.mxu1 %v1465_v13 }
 0x217   : > { %v673_v55 = vpack.c.bf16 %v659_v54, %v656_v51 }
 0x219   : > { %1142 = vmatpush3.bf16.msra.mxu0 %v673_v55 }
 0x21c   : > { %1138 = vmatmul.mubr.msk.bf16.vlgmr.msra.gmra.mxu1 %vm347_vm0, %v597_v50  ;;  %1144 = vmatmul.mubr.msk.bf16.vlgmr.msra.gmra.mxu0 %vm347_vm0, %v597_v50 }
 0x21d   : > { %1148 = vmatpush3.bf16.msra.mxu1 %v674_v56  ;;  %1149 = vmatprep.mubr.msk.bf16.mxu1 %vm1466_vm1, %v1465_v13 }
 0x224   : > { %1150 = vmatmul.mubr.msk.bf16.vlgmr.msra.gmra.mxu1 %vm347_vm0, %v597_v50 }
 0x225   : > { %1366 = shalt.err (!%p1363_p3)
}
 0x226   : > { %s1367_s27 = scalar_lea.hbm %s1720_s9, 512  ;;  %s1371_s20 = scalar_lea.hbm %s1804_s5, 1024 }
 0x227   : > { %p1368_p2 = scmp.ne.s32.totalorder %s1720_s9, %s1367_s27  ;;  %p1372_p11 = scmp.lt.s32.totalorder %s1720_s9, %s1804_s5 }
 0x228   : > { %p1373_p4 = scmp.lt.s32.totalorder %s1371_s20, %s1367_s27 }
 0x229   : > { %p1369_p9 = pnand %p1368_p2, %p1823_p12 }
 0x22a   : > { %p1374_p6 = por %p1373_p4, %p1372_p11 }
 0x22b   : > { %p1370_p5 = pneg %p1369_p9 }
 0x22d   : > { %p1375_p8 = pnand %p1374_p6, %p1370_p5 }
 0x22f   : > { %1378 = shalt.err (!%p1375_p8)
}
 0x230   : > { %s1468_s19 = smov 128   ;;  %s1469_s10 = smov 8   ;;  %vm838_vm3 = vcmask 27648  }
 0x231   : > { %1167 = dma.vmem_to_hbm [thread:$0]  (%p1823_p12), %s1714_s26, 512, %s1720_s9, %s844_s7, %s1468_s19, %s1468_s19, %s1469_s10  }
 0x232   : > { %s1028_s12 = sshll.u32 %s1643_s15, 4  ;;  %s1058_s26 = sshll.u32 %s1529_s25, 8 }
 0x233   : > { %s321_s16 = scalar_lea.vmem [#allocation11], %s1028_s12  ;;  %s1755_s27 = scalar_lea.hbm %s1805_s6, %s1058_s26 }
 0x234   : > { %s878_s14 = sshll.u32 %s321_s16, 4  ;;  %s849_s29 = scalar_lea.sflag [#allocation12], %s1643_s15  ;;  %s1750_s14 = int_to_ptr.vmem [resolvable:$true] %s878_s14 }
 0x235   : > { %s1379_s25 = scalar_lea.vmem %s1750_s14, 256  ;;  %s1470_s18 = smov [#allocation11]  }
 0x236   : > { %p1380_p7 = scmp.ne.s32.totalorder %s1750_s14, %s1379_s25  ;;  %s1383_s20 = sshll.u32 %s1470_s18, 4  ;;  %s1384_s20 = int_to_ptr.vmem [resolvable:$false] %s1383_s20 }
 0x237   : > { %s1385_s30 = scalar_lea.vmem %s1384_s20, 512  ;;  %p1386_p0 = scmp.lt.s32.totalorder %s1750_s14, %s1384_s20 }
 0x238   : > { %p1381_p10 = pnand %p1380_p7, %p1823_p12  ;;  %p1387_p1 = scmp.lt.s32.totalorder %s1385_s30, %s1379_s25 }
 0x23a   : > { %p1382_p13 = pneg %p1381_p10  ;;  %p1388_p3 = por %p1387_p1, %p1386_p0 }
 0x23c   : > { %p1389_p2 = pnand %p1388_p3, %p1382_p13 }
 0x2d4   : > { %v712_v57 = vpop.f32.mrf.mxu1 }
 0x2d5   : > { %839 = vst.msk [vmem:[%s321_s16] sm:$0xf] %vm838_vm3, %v712_v57 }
 0x2d6   : > { %v1133_v58 = vpop.f32.mrf.mxu1 }
 0x2d8   : > { %v715_v59 = vpop.f32.mrf.mxu1 }
 0x2da   : > { %v1134_v60 = vpop.f32.mrf.mxu1 }
 0x2dc   : > { %v752_v61 = vpop.f32.mrf.mxu1  ;;  %v792_v62 = vpop.f32.mrf.mxu0 }
 0x2dd   : > { %840 = vst.msk [vmem:[%s321_s16 + $0x4] sm:$0xf] %vm838_vm3, %v752_v61  ;;  %841 = vst.msk [vmem:[%s321_s16 + $0x8] sm:$0xf] %vm838_vm3, %v792_v62 }
 0x2de   : > { %v1139_v63 = vpop.f32.mrf.mxu1  ;;  %v1145_v0 = vpop.f32.mrf.mxu0 }
 0x2e0   : > { %v755_v1 = vpop.f32.mrf.mxu1  ;;  %v795_v2 = vpop.f32.mrf.mxu0 }
 0x2e2   : > { %v1140_v3 = vpop.f32.mrf.mxu1  ;;  %v1146_v4 = vpop.f32.mrf.mxu0 }
 0x2e4   : > { %v832_v5 = vpop.f32.mrf.mxu1 }
 0x2e5   : > { %842 = vst.msk [vmem:[%s321_s16 + $0xc] sm:$0xf] %vm838_vm3, %v832_v5 }
 0x2e6   : > { %v1151_v6 = vpop.f32.mrf.mxu1 }
 0x2e7   : > { %1392 = shalt.err (!%p1389_p2)
}
 0x2e8   : > { %s1393_s17 = scalar_lea.hbm %s1755_s27, 256  ;;  %s1397_s12 = scalar_lea.hbm %s1805_s6, 512 }
 0x2e9   : > { %p1394_p9 = scmp.ne.s32.totalorder %s1755_s27, %s1393_s17  ;;  %p1398_p4 = scmp.lt.s32.totalorder %s1755_s27, %s1805_s6 }
 0x2ea   : > { %p1399_p6 = scmp.lt.s32.totalorder %s1397_s12, %s1393_s17 }
 0x2eb   : > { %p1395_p5 = pnand %p1394_p9, %p1823_p12 }
 0x2ec   : > { %p1400_p8 = por %p1399_p6, %p1398_p4 }
 0x2ed   : > { %p1396_p11 = pneg %p1395_p5 }
 0x2ef   : > { %p1401_p7 = pnand %p1400_p8, %p1396_p11 }
 0x2f1   : > { %1404 = shalt.err (!%p1401_p7)
}
 0x2f2   : > { %s1471_s9 = smov 64   ;;  %s1472_s7 = smov 4   ;;  %v835_v7 = vpop.f32.mrf.mxu1 }
 0x2f3   : > { %1168 = dma.vmem_to_hbm [thread:$0]  (%p1823_p12), %s1750_s14, 256, %s1755_s27, %s849_s29, %s1471_s9, %s1471_s9, %s1472_s7  }
 0x2f4   : > { %v1152_v8 = vpop.f32.mrf.mxu1 }
 0x2f5 PF: > { %s893_s25 = sand.u32 1, %s1443_s21   ;;  %p1824_p10 = scmp.ne.s32.totalorder %s1811_s28, 0 }
 0x2f6   : > { %p1825_p13 = scmp.ge.s32.totalorder %s1455_s24, 2  ;;  %s894_s18 = scalar_lea.sflag [#allocation4], %s893_s25 }
 0x2f8   : > { %p1186_p0 = pnand %p1825_p13, %p1824_p10 }
 0x2fa   : > { %p1187_p1 = pneg %p1186_p0 }
 0x2fc   : > { %1434 = dma.done.wait (%p1187_p1), %s894_s18, 512  }
 0x2fd   : > { %1436 = vsyncadd (%p1187_p1), %s894_s18, 4294966784  ;;  %s903_s20 = scalar_lea.sflag [#allocation12], %s893_s25 }
 0x2fe   : > { %1438 = dma.done.wait (%p1187_p1), %s903_s20, 256  }
 0x2ff   : > { %1440 = vsyncadd (%p1187_p1), %s903_s20, 4294967040  ;;  %p25_p12 = scmp.ge.s32.totalorder %s1588_s8, 4   ;;  %s1826_s21 = smov %s1447_s22 }
 0x300   : > { %s1827_s22 = smov %s1451_s23  ;;  %s1828_s23 = smov %s1598_s11 }
 0x301   : > { %s1829_s24 = smov %s1588_s8  ;;  %27 = sbr.rel (!%p25_p12) target bundleno = 9 (0x9), region = 114 }
 0x306   :  { %908 = vsyncpa [#allocation3], 1 }
 0x307   :  { %910 = vsyncpa [#allocation3 + $0x1], 1 }
 0x308   :  { %911 = vsyncpa [#allocation6], 1 }
 0x309   :  { %912 = vsyncpa [#allocation9], 1 }
 0x30a   :  { %913 = vsyncpa [#allocation4], 1 }
 0x30b   :  { %915 = vsyncpa [#allocation4 + $0x1], 1 }
 0x30c   :  { %916 = vsyncpa [#allocation12], 1 }
 0x30d   :  { %918 = vsyncpa [#allocation12 + $0x1], 1 }

</bundles_post_ra>
